<compile_context>
chip_gen: v7x
topology: tpu7x:2x2x1
jax: 0.10.0
libtpu: 0.0.40
codegen_flags: <defaults>
</compile_context>

<pallas_src>
import math

import jax
import jax.numpy as jnp
from jax.experimental import pallas as pl
from jax.experimental.pallas import tpu as pltpu


def _round_up(v, m):
    return ((v + m - 1) // m) * m


def _make_neck_kernel(relu_flags, has_pool):
    """Kernel refs: (x_ref, shifts_ref, w_0 .. w_{n-1}, out_ref)."""

    def kernel(x_ref, shifts_ref, *rest):
        w_refs, out_ref = rest[:-1], rest[-1]
        x = x_ref[...]                                   # native dtype (f32 / bf16)
        if has_pool:
            # AdaptiveAvgPool2d((1,1)): accumulate in f32; the 1/(H*W) factor is
            # constant-folded into W0 by the wrapper, so only a sum is needed here.
            x = jnp.sum(x.astype(jnp.float32), axis=-1)  # [TB, C]
        else:
            x = x.astype(jnp.float32)

        for i, relu in enumerate(relu_flags):
            w = w_refs[i][...]                           # [in_pad, out_pad], lane-dense
            x = jnp.dot(x, w, preferred_element_type=jnp.float32)
            x = x + shifts_ref[i:i + 1, : w.shape[1]]    # bias / folded-BN shift
            if relu:
                x = jnp.maximum(x, 0.0)

        out_ref[...] = x                                 # unmasked full-lane store

    return kernel


class NonlinearNeckPallas:
    """JAX/Pallas re-implementation of NonlinearNeck.forward (one fused pallas_call)."""

    _BN_EPS = 1e-5

    def __init__(self, layer_info, avgpool=False, seed=0):
        self.avgpool = avgpool
        key = jax.random.PRNGKey(seed)

        weights, shift_rows, relu_flags, ref_layers, out_pads = [], [], [], [], []
        prev_out = None
        prev_out_pad = None
        bn_scale = 1.0 / math.sqrt(1.0 + self._BN_EPS)   # BN eval after init_weights()

        for li, spec in enumerate(layer_info):
            in_f = spec["in_features"]
            out_f = spec["out_features"]
            norm = spec.get("norm", False)
            bias = spec.get("bias", True) and (not norm)  # build_linear_layer semantics
            relu = spec.get("relu", True)

            if prev_out is not None:
                assert in_f == prev_out, "layer_info widths must chain"

            out_pad = _round_up(out_f, 128)
            in_pad = in_f if li == 0 else prev_out_pad

            key, kw, kb = jax.random.split(key, 3)
            bound = 1.0 / math.sqrt(in_f)
            # torch.nn.Linear.reset_parameters(): U(-1/sqrt(in), 1/sqrt(in)).
            # Stored transposed ([in, out]) so forward is x @ W.
            w = jax.random.uniform(kw, (in_f, out_f), jnp.float32, -bound, bound)
            b = (jax.random.uniform(kb, (out_f,), jnp.float32, -bound, bound)
                 if bias else None)
            ref_layers.append((w, b, norm, relu))

            # Constant-fold BatchNorm1d (eval, init stats) into W / shift:
            #   y = (x @ W) * s + t,  s = 1/sqrt(1+eps),  t = 0.
            w_fold = w * bn_scale if norm else w
            shift = b if bias else jnp.zeros((out_f,), jnp.float32)

            # Lane-dense zero padding (keeps padded activation columns exactly 0).
            w_fold = jnp.pad(w_fold, ((0, in_pad - in_f), (0, out_pad - out_f)))
            shift_rows.append(jnp.pad(shift, (0, out_pad - out_f)))

            weights.append(w_fold)
            relu_flags.append(relu)
            out_pads.append(out_pad)
            prev_out, prev_out_pad = out_f, out_pad

        max_out_pad = max(out_pads)
        # One packed [n_layers, max_out_pad] array for all bias / BN-shift vectors.
        shifts = jnp.stack([jnp.pad(r, (0, max_out_pad - r.shape[0]))
                            for r in shift_rows])

        self.out_features = prev_out
        self._out_pad = prev_out_pad
        self._relu_flags = tuple(relu_flags)
        self._weights = tuple(weights)
        self._shifts = shifts
        self._ref_layers = tuple(ref_layers)
        self._w0_pool_cache = {}          # H*W -> W0 with 1/(H*W) folded in

        self._forward = jax.jit(self._forward_impl)

    # ------------------------------------------------------------------ forward
    def _forward_impl(self, x, shifts, *weights):
        has_pool = (x.ndim == 4)
        if has_pool:
            B, C, H, W = x.shape
            x_in = x.reshape(B, C, H * W)     # native dtype: no f32 upcast / extra copy
        else:
            B = x.shape[0]
            x_in = x

        # Batch tile: keep 2x double-buffered x tiles under ~8 MiB; full B if small.
        feat_bytes = (x_in.size // B) * x_in.dtype.itemsize
        TB = 128
        while TB > 8 and 2 * TB * feat_bytes > (8 << 20):
            TB //= 2
        if B <= TB:
            TB = B                             # block == full batch dim (always legal)
        grid = (pl.cdiv(B, TB),)

        if has_pool:
            x_spec = pl.BlockSpec((TB, x_in.shape[1], x_in.shape[2]),
                                  lambda b: (b, 0, 0))
        else:
            x_spec = pl.BlockSpec((TB, x_in.shape[1]), lambda b: (b, 0))

        def resident(shape):                   # params: same block every step -> stay in VMEM
            return pl.BlockSpec(shape, lambda b: (0,) * len(shape))

        in_specs = [x_spec, resident(shifts.shape)] + [resident(w.shape) for w in weights]
        out_spec = pl.BlockSpec((TB, self._out_pad), lambda b: (b, 0))

        # VMEM budget: resident params + double-buffered x/out tiles + activation slack.
        param_bytes = shifts.size * shifts.dtype.itemsize + sum(
            w.size * w.dtype.itemsize for w in weights)
        tile_bytes = TB * feat_bytes + TB * self._out_pad * 4
        act_bytes = 3 * TB * max(w.shape[1] for w in weights) * 4
        est = param_bytes + 2 * tile_bytes + act_bytes
        vmem_limit = int(min(max(2 * est + (2 << 20), 32 << 20), 64 << 20))

        kernel = _make_neck_kernel(self._relu_flags, has_pool)
        out_padded = pl.pallas_call(
            kernel,
            out_shape=jax.ShapeDtypeStruct((B, self._out_pad), jnp.float32),
            grid=grid,
            in_specs=in_specs,
            out_specs=out_spec,
            compiler_params=pltpu.CompilerParams(
                dimension_semantics=("parallel",),   # shards batch over v7x's 2 TCs
                vmem_limit_bytes=vmem_limit),
        )(x_in, shifts, *weights)

        if self._out_pad != self.out_features:
            out_padded = out_padded[:, : self.out_features]
        return out_padded

    def __call__(self, x):
        weights = self._weights
        if self.avgpool and x.ndim == 4:
            hw = int(x.shape[2]) * int(x.shape[3])
            w0 = self._w0_pool_cache.get(hw)
            if w0 is None:
                # Constant-fold the 1/(H*W) average into W0 (once per spatial size).
                w0 = self._weights[0] * (1.0 / hw)
                self._w0_pool_cache[hw] = w0
            weights = (w0,) + weights[1:]
        return self._forward(x, self._shifts, *weights)

    # ----------------------------------------------------------- jnp reference
    def reference(self, x):
        """Unfolded, un-padded reference mirroring the PyTorch module (eval mode)."""
        if self.avgpool and x.ndim == 4:
            B, C, H, W = x.shape
            h = jnp.mean(x.reshape(B, C, H * W).astype(jnp.float32), axis=-1)
        else:
            h = x.astype(jnp.float32)
        for w, b, norm, relu in self._ref_layers:
            h = h @ w
            if b is not None:
                h = h + b
            if norm:
                # BatchNorm1d eval after init_weights(): gamma=1, beta=0, mean=0, var=1
                h = h / jnp.sqrt(jnp.float32(1.0 + self._BN_EPS))
            if relu:
                h = jnp.maximum(h, 0.0)
        return h


# ------------------------------------ main -----------------------------------

if __name__ == "__main__":
    key = jax.random.PRNGKey(0)
    k1, k2 = jax.random.split(key)

    # Neck with AdaptiveAvgPool2d((1,1)) front-end: 64 -> 32 (ReLU) -> 32 (BN, no ReLU)
    layer_info = [
        dict(in_features=64, out_features=32, norm=False, bias=True, relu=True),
        dict(in_features=32, out_features=32, norm=True, bias=True, relu=False),
    ]
    neck = NonlinearNeckPallas(layer_info, avgpool=True, seed=0)

    B, C, H, W = 2, 64, 16, 16
    x = jax.random.normal(k1, (B, C, H, W), dtype=jnp.float32)
    out = neck(x)
    jax.block_until_ready(out)
    assert out.shape == (B, 32), out.shape
    ref = neck.reference(x)
    assert jnp.allclose(out, ref, atol=1e-5, rtol=1e-5), \
        float(jnp.max(jnp.abs(out - ref)))

    # Same neck fed bf16 straight from the "backbone" (no wrapper upcast;
    # pooling still accumulates in f32 inside the kernel).
    x_bf16 = x.astype(jnp.bfloat16)
    out_bf = neck(x_bf16)
    jax.block_until_ready(out_bf)
    assert out_bf.shape == (B, 32), out_bf.shape
    ref_bf = neck.reference(x_bf16)
    assert jnp.allclose(out_bf, ref_bf, atol=1e-3, rtol=1e-3), \
        float(jnp.max(jnp.abs(out_bf - ref_bf)))

    # Neck without avgpool (input already [B, in_features])
    neck2 = NonlinearNeckPallas(
        [dict(in_features=32, out_features=16, norm=False, bias=True, relu=False)],
        avgpool=False, seed=1)
    x2 = jax.random.normal(k2, (B, 32), dtype=jnp.float32)
    out2 = neck2(x2)
    jax.block_until_ready(out2)
    assert out2.shape == (B, 16), out2.shape
    ref2 = neck2.reference(x2)
    assert jnp.allclose(out2, ref2, atol=1e-5, rtol=1e-5), \
        float(jnp.max(jnp.abs(out2 - ref2)))

    print("KERNEL_OK")
</pallas_src>

<mosaic_0001>
module attributes {stable_mosaic.version = 11 : i64} {
  func.func @kernel(%arg0: i32, %arg1: memref<2x64x256xf32, #tpu.memory_space<vmem>>, %arg2: memref<2x128xf32, #tpu.memory_space<vmem>>, %arg3: memref<64x128xf32, #tpu.memory_space<vmem>>, %arg4: memref<128x128xf32, #tpu.memory_space<vmem>>, %arg5: memref<2x128xf32, #tpu.memory_space<vmem>>) attributes {dimension_semantics = [#tpu.dimension_semantics<parallel>], iteration_bounds = array<i64: 1>, scalar_prefetch = 0 : i64, scratch_operands = 0 : i64, tpu.core_type = #tpu.core_type<tc>, window_params = [{transform_indices = @transform_0, window_bounds = array<i64: 2, 64, 256>}, {pipeline_mode = #tpu.pipeline_mode<synchronous>, transform_indices = @transform_1, window_bounds = array<i64: 2, 128>}, {pipeline_mode = #tpu.pipeline_mode<synchronous>, transform_indices = @transform_2, window_bounds = array<i64: 64, 128>}, {pipeline_mode = #tpu.pipeline_mode<synchronous>, transform_indices = @transform_3, window_bounds = array<i64: 128, 128>}, {transform_indices = @transform_4, window_bounds = array<i64: 2, 128>}]} {
    %c0 = arith.constant 0 : index
    %c0_0 = arith.constant 0 : index
    %c0_1 = arith.constant 0 : index
    %0 = vector.load %arg1[%c0, %c0_0, %c0_1] : memref<2x64x256xf32, #tpu.memory_space<vmem>>, vector<2x64x256xf32>
    %cst = arith.constant dense<0.000000e+00> : vector<2x64xf32>
    %1 = vector.multi_reduction <add>, %0, %cst [2] : vector<2x64x256xf32> to vector<2x64xf32>
    %c0_2 = arith.constant 0 : index
    %c0_3 = arith.constant 0 : index
    %2 = vector.load %arg3[%c0_2, %c0_3] : memref<64x128xf32, #tpu.memory_space<vmem>>, vector<64x128xf32>
    %cst_4 = arith.constant dense<0.000000e+00> : vector<2x128xf32>
    %3 = tpu.matmul %1, %2, %cst_4 {dimension_numbers = #tpu.dot_dimension_numbers<[1], [0], [0], [1], [0, 0, 1, 1], [], []>} : vector<2x64xf32>, vector<64x128xf32>, vector<2x128xf32> -> vector<2x128xf32>
    %c0_5 = arith.constant 0 : index
    %c0_6 = arith.constant 0 : index
    %4 = vector.load %arg2[%c0_5, %c0_6] : memref<2x128xf32, #tpu.memory_space<vmem>>, vector<1x128xf32>
    %5 = vector.broadcast %4 : vector<1x128xf32> to vector<2x128xf32>
    %6 = arith.addf %3, %5 : vector<2x128xf32>
    %cst_7 = arith.constant 0.000000e+00 : f32
    %7 = vector.broadcast %cst_7 : f32 to vector<2x128xf32>
    %8 = arith.maximumf %6, %7 : vector<2x128xf32>
    %c0_8 = arith.constant 0 : index
    %c0_9 = arith.constant 0 : index
    %9 = vector.load %arg4[%c0_8, %c0_9] : memref<128x128xf32, #tpu.memory_space<vmem>>, vector<128x128xf32>
    %cst_10 = arith.constant dense<0.000000e+00> : vector<2x128xf32>
    %10 = tpu.matmul %8, %9, %cst_10 {dimension_numbers = #tpu.dot_dimension_numbers<[1], [0], [0], [1], [0, 0, 1, 1], [], []>} : vector<2x128xf32>, vector<128x128xf32>, vector<2x128xf32> -> vector<2x128xf32>
    %c1 = arith.constant 1 : index
    %c0_11 = arith.constant 0 : index
    %11 = vector.load %arg2[%c1, %c0_11] : memref<2x128xf32, #tpu.memory_space<vmem>>, vector<1x128xf32>
    %12 = vector.broadcast %11 : vector<1x128xf32> to vector<2x128xf32>
    %13 = arith.addf %10, %12 : vector<2x128xf32>
    %c0_12 = arith.constant 0 : index
    %c0_13 = arith.constant 0 : index
    %14 = vector.load %arg5[%c0_12, %c0_13] : memref<2x128xf32, #tpu.memory_space<vmem>>, vector<2x128xf32>
    tpu.vector_store %arg5[%c0_12, %c0_13], %13 {strides = array<i32>} : memref<2x128xf32, #tpu.memory_space<vmem>>, vector<2x128xf32>,
    return
  }
  func.func @transform_0(%arg0: i32) -> (i32, i32, i32) {
    %c0_i32 = arith.constant 0 : i32
    %c0_i32_0 = arith.constant 0 : i32
    %c0_i32_1 = arith.constant 0 : i32
    return %arg0, %c0_i32, %c0_i32_0 : i32, i32, i32
  }
  func.func @transform_1(%arg0: i32) -> (i32, i32) {
    %c0_i32 = arith.constant 0 : i32
    %c0_i32_0 = arith.constant 0 : i32
    %c0_i32_1 = arith.constant 0 : i32
    return %c0_i32, %c0_i32_0 : i32, i32
  }
  func.func @transform_2(%arg0: i32) -> (i32, i32) {
    %c0_i32 = arith.constant 0 : i32
    %c0_i32_0 = arith.constant 0 : i32
    %c0_i32_1 = arith.constant 0 : i32
    return %c0_i32, %c0_i32_0 : i32, i32
  }
  func.func @transform_3(%arg0: i32) -> (i32, i32) {
    %c0_i32 = arith.constant 0 : i32
    %c0_i32_0 = arith.constant 0 : i32
    %c0_i32_1 = arith.constant 0 : i32
    return %c0_i32, %c0_i32_0 : i32, i32
  }
  func.func @transform_4(%arg0: i32) -> (i32, i32) {
    %c0_i32 = arith.constant 0 : i32
    %c0_i32_0 = arith.constant 0 : i32
    return %arg0, %c0_i32 : i32, i32
  }
}

</mosaic_0001>

<bundles_post_ra>
// kernel: _forward_impl.1
= control target key start
LH: loop header
LB: loop body
LE: loop exit
PB: predicated region body
PF: predicated region fallthrough
CT: control target
= control target key end

     0   :  { %s775_s0 = inlined_call_operand.vmem [shape: f32[2,64,256], index: 0, kind: input, shape index: {}]   ;;  %s776_s1 = inlined_call_operand.vmem [shape: f32[2,128], index: 1, kind: input, shape index: {}]   ;;  %s777_s2 = inlined_call_operand.vmem [shape: f32[64,128], index: 2, kind: input, shape index: {}]   ;;  %s778_s3 = inlined_call_operand.vmem [shape: f32[128,128], index: 3, kind: input, shape index: {}]   ;;  %s779_s4 = inlined_call_operand.hbm [shape: f32[2,128], index: 4, kind: output, shape index: {}]  }
   0x1   :  { %v34_v0 = vld [vmem:[%s775_s0 + $0x80] sm:$0xff]  ;;  %v35_v1 = vld [vmem:[%s775_s0 + $0x88] sm:$0xff]  ;;  %v36_v5 = vld [vmem:[%s775_s0 + $0x90] sm:$0xff] }
   0x2   :  { %v18_v2 = vld [vmem:[%s775_s0] sm:$0xff]  ;;  %v74_v3 = vadd.f32 %v35_v1, %v34_v0  ;;  %v19_v4 = vld [vmem:[%s775_s0 + $0x8] sm:$0xff]  ;;  %v37_v6 = vld [vmem:[%s775_s0 + $0x98] sm:$0xff] }
   0x3   :  { %v50_v7 = vadd.f32 %v19_v4, %v18_v2  ;;  %v20_v8 = vld [vmem:[%s775_s0 + $0x10] sm:$0xff]  ;;  %v21_v9 = vld [vmem:[%s775_s0 + $0x18] sm:$0xff]  ;;  %v77_v10 = vadd.f32 %v37_v6, %v36_v5  ;;  %v38_v12 = vld [vmem:[%s775_s0 + $0xa0] sm:$0xff] }
   0x4   :  { %75 = vadd.xlane.f32.xlu1 %v74_v3  ;;  %v53_v11 = vadd.f32 %v21_v9, %v20_v8  ;;  %v39_v13 = vld [vmem:[%s775_s0 + $0xa8] sm:$0xff]  ;;  %v22_v14 = vld [vmem:[%s775_s0 + $0x20] sm:$0xff]  ;;  %v40_v18 = vld [vmem:[%s775_s0 + $0xb0] sm:$0xff] }
   0x5   :  { %51 = vadd.xlane.f32.xlu0 %v50_v7  ;;  %v23_v15 = vld [vmem:[%s775_s0 + $0x28] sm:$0xff]  ;;  %v80_v16 = vadd.f32 %v39_v13, %v38_v12  ;;  %v41_v19 = vld [vmem:[%s775_s0 + $0xb8] sm:$0xff]  ;;  %v24_v20 = vld [vmem:[%s775_s0 + $0x30] sm:$0xff] }
   0x6   :  { %v56_v17 = vadd.f32 %v23_v15, %v22_v14  ;;  %v25_v21 = vld [vmem:[%s775_s0 + $0x38] sm:$0xff] }
   0x8   :  { %78 = vadd.xlane.f32.xlu1 %v77_v10 }
   0x9   :  { %54 = vadd.xlane.f32.xlu0 %v53_v11 }
   0xa   :  { %9 = vsyncpa [#allocation3], 0  ;;  %v83_v22 = vadd.f32 %v41_v19, %v40_v18  ;;  %v59_v23 = vadd.f32 %v25_v21, %v24_v20  ;;  %v42_v24 = vld [vmem:[%s775_s0 + $0xc0] sm:$0xff]  ;;  %v43_v25 = vld [vmem:[%s775_s0 + $0xc8] sm:$0xff]  ;;  %v550_v51 = vmov 0.0|0.0   ;;  %vm551_vm0 = vmmov 0  }
   0xb   :  { %v26_v26 = vld [vmem:[%s775_s0 + $0x40] sm:$0xff]  ;;  %v27_v27 = vld [vmem:[%s775_s0 + $0x48] sm:$0xff]  ;;  %v86_v28 = vadd.f32 %v43_v25, %v42_v24  ;;  %v44_v30 = vld [vmem:[%s775_s0 + $0xd0] sm:$0xff]  ;;  %486 = vmatprep.subr.bf16.mxu0 %v550_v51  ;;  %498 = vmatprep.subr.bf16.mxu1 %v550_v51  ;;  %v552_v61 = vmov 0.0   ;;  %vm138_vm1 = vcmask 130112   ;;  %vm145_vm2 = vcmask 195712  }
   0xc   :  { %81 = vadd.xlane.f32.xlu1 %v80_v16  ;;  %v62_v29 = vadd.f32 %v27_v27, %v26_v26  ;;  %v45_v31 = vld [vmem:[%s775_s0 + $0xd8] sm:$0xff]  ;;  %v28_v32 = vld [vmem:[%s775_s0 + $0x50] sm:$0xff]  ;;  %v46_v36 = vld [vmem:[%s775_s0 + $0xe0] sm:$0xff]  ;;  %448 = vmatprep.mubr.msk.f32.mxu0 %vm551_vm0, %v552_v61  ;;  %vm152_vm3 = vcmask 261312   ;;  %vm159_vm4 = vcmask 326912   ;;  %vm166_vm5 = vcmask 392512  }
   0xd   :  { %57 = vadd.xlane.f32.xlu0 %v56_v17  ;;  %v29_v33 = vld [vmem:[%s775_s0 + $0x58] sm:$0xff]  ;;  %v89_v34 = vadd.f32 %v45_v31, %v44_v30  ;;  %v47_v37 = vld [vmem:[%s775_s0 + $0xe8] sm:$0xff]  ;;  %v30_v38 = vld [vmem:[%s775_s0 + $0x60] sm:$0xff]  ;;  %483 = vmatprep.mubr.msk.f32.mxu1 %vm551_vm0, %v552_v61  ;;  %vm173_vm6 = vcmask 458112   ;;  %vm180_vm7 = vcmask 523712   ;;  %vm221_vm8 = vcmask 1041409  }
   0xe   :  { %v65_v35 = vadd.f32 %v29_v33, %v28_v32  ;;  %v31_v39 = vld [vmem:[%s775_s0 + $0x68] sm:$0xff]  ;;  %v92_v40 = vadd.f32 %v47_v37, %v46_v36  ;;  %v48_v42 = vld [vmem:[%s775_s0 + $0xf0] sm:$0xff]  ;;  %v49_v43 = vld [vmem:[%s775_s0 + $0xf8] sm:$0xff]  ;;  %vm223_vm9 = vcmask 523264   ;;  %s553_s23 = smov [#allocation2]  }
   0xf   :  { %v68_v41 = vadd.f32 %v31_v39, %v30_v38  ;;  %v32_v44 = vld [vmem:[%s775_s0 + $0x70] sm:$0xff]  ;;  %v33_v45 = vld [vmem:[%s775_s0 + $0x78] sm:$0xff]  ;;  %v95_v46 = vadd.f32 %v49_v43, %v48_v42  ;;  %v98_v48 = vld [vmem:[%s777_s2] sm:$0xff]  ;;  %s395_s24 = sshll.u32 %s553_s23, 4  ;;  %s396_s24 = int_to_ptr.vmem [resolvable:$true] %s395_s24 }
  0x10   :  { %84 = vadd.xlane.f32.xlu1 %v83_v22  ;;  %v71_v47 = vadd.f32 %v33_v45, %v32_v44  ;;  %v99_v49 = vld [vmem:[%s777_s2 + $0x8] sm:$0xff]  ;;  %v100_v52 = vld [vmem:[%s777_s2 + $0x10] sm:$0xff]  ;;  %v101_v53 = vld [vmem:[%s777_s2 + $0x18] sm:$0xff]  ;;  %p531_p1 = scmp.lt.s32.totalorder %s396_s24, %s396_s24 }
  0x11   :  { %60 = vadd.xlane.f32.xlu0 %v59_v23  ;;  %v487_v50 = vpack.c.bf16 %v99_v49, %v98_v48  ;;  %v490_v54 = vpack.c.bf16 %v101_v53, %v100_v52  ;;  %v102_v55 = vld [vmem:[%s777_s2 + $0x20] sm:$0xff]  ;;  %v103_v56 = vld [vmem:[%s777_s2 + $0x28] sm:$0xff]  ;;  %v104_v58 = vld [vmem:[%s777_s2 + $0x30] sm:$0xff]  ;;  %v127_v23 = vlaneseq }
  0x12   :  { %v493_v57 = vpack.c.bf16 %v103_v56, %v102_v55  ;;  %v105_v59 = vld [vmem:[%s777_s2 + $0x38] sm:$0xff]  ;;  %v297_v62 = vld [vmem:[%s778_s3] sm:$0xff]  ;;  %v298_v63 = vld [vmem:[%s778_s3 + $0x8] sm:$0xff] }
  0x13   :  { %488 = vmatpush3.bf16.msra.mxu0 %v487_v50  ;;  %v496_v60 = vpack.c.bf16 %v105_v59, %v104_v58  ;;  %v299_v0 = vld [vmem:[%s778_s3 + $0x10] sm:$0xff]  ;;  %v499_v1 = vpack.c.bf16 %v298_v63, %v297_v62  ;;  %v300_v2 = vld [vmem:[%s778_s3 + $0x18] sm:$0xff]  ;;  %v301_v4 = vld [vmem:[%s778_s3 + $0x20] sm:$0xff]  ;;  %v128_v26 = vand.u32 127, %v127_v23  ;;  %v130_v31 = vshrl.u32 %v127_v23, 7 }
  0x14   :  { %87 = vadd.xlane.f32.xlu1 %v86_v28  ;;  %489 = vmatprep.subr.bf16.mxu0 %v550_v51  ;;  %v502_v3 = vpack.c.bf16 %v300_v2, %v299_v0  ;;  %v302_v5 = vld [vmem:[%s778_s3 + $0x28] sm:$0xff]  ;;  %v303_v7 = vld [vmem:[%s778_s3 + $0x30] sm:$0xff]  ;;  %v304_v8 = vld [vmem:[%s778_s3 + $0x38] sm:$0xff] }
  0x15   :  { %63 = vadd.xlane.f32.xlu0 %v62_v29  ;;  %500 = vmatpush3.bf16.msra.mxu1 %v499_v1  ;;  %v505_v6 = vpack.c.bf16 %v302_v5, %v301_v4  ;;  %v508_v9 = vpack.c.bf16 %v304_v8, %v303_v7  ;;  %v305_v10 = vld [vmem:[%s778_s3 + $0x40] sm:$0xff]  ;;  %v306_v11 = vld [vmem:[%s778_s3 + $0x48] sm:$0xff]  ;;  %v307_v13 = vld [vmem:[%s778_s3 + $0x50] sm:$0xff]  ;;  %v133_v28 = vadd.s32 4294967288, %v128_v26  ;;  %v140_v30 = vadd.s32 4294967280, %v128_v26 }
  0x16   :  { %501 = vmatprep.subr.bf16.mxu1 %v550_v51  ;;  %v511_v12 = vpack.c.bf16 %v306_v11, %v305_v10  ;;  %v308_v14 = vld [vmem:[%s778_s3 + $0x58] sm:$0xff]  ;;  %v309_v16 = vld [vmem:[%s778_s3 + $0x60] sm:$0xff]  ;;  %v310_v17 = vld [vmem:[%s778_s3 + $0x68] sm:$0xff]  ;;  %v147_v32 = vadd.s32 4294967272, %v128_v26  ;;  %v154_v33 = vadd.s32 4294967264, %v128_v26  ;;  %v161_v37 = vadd.s32 4294967256, %v128_v26 }
  0x17   :  { %491 = vmatpush3.bf16.msra.mxu0 %v490_v54  ;;  %v514_v15 = vpack.c.bf16 %v308_v14, %v307_v13  ;;  %v517_v18 = vpack.c.bf16 %v310_v17, %v309_v16  ;;  %v143_v38 = vsub.s32 %v140_v30, %v130_v31  ;;  %v168_v39 = vadd.s32 4294967248, %v128_v26  ;;  %v403_v23 = vld [vmem:[%s776_s1] ss:$0 sm:$0xff] }
  0x18   :  { %90 = vadd.xlane.f32.xlu1 %v89_v34  ;;  %492 = vmatprep.subr.bf16.mxu0 %v550_v51  ;;  %v157_v42 = vsub.s32 %v154_v33, %v130_v31  ;;  %v164_v45 = vsub.s32 %v161_v37, %v130_v31 }
  0x19   :  { %66 = vadd.xlane.f32.xlu0 %v65_v35  ;;  %503 = vmatpush3.bf16.msra.mxu1 %v502_v3  ;;  %v136_v35 = vsub.s32 %v133_v28, %v130_v31  ;;  %v171_v50 = vsub.s32 %v168_v39, %v130_v31  ;;  %v405_v28 = vld [vmem:[%s776_s1 + $0x1] ss:$0 sm:$0xff] }
  0x1a   :  { %504 = vmatprep.subr.bf16.mxu1 %v550_v51 }
  0x1b   :  { %494 = vmatpush3.bf16.msra.mxu0 %v493_v57 }
  0x1c   :  { %93 = vadd.xlane.f32.xlu1 %v92_v40  ;;  %495 = vmatprep.subr.bf16.mxu0 %v550_v51  ;;  %v131_v40 = vsub.s32 %v128_v26, %v130_v31 }
  0x1d   :  { %69 = vadd.xlane.f32.xlu0 %v68_v41  ;;  %506 = vmatpush3.bf16.msra.mxu1 %v505_v6  ;;  %v150_v41 = vsub.s32 %v147_v32, %v130_v31 }
  0x1e   :  { %507 = vmatprep.subr.bf16.mxu1 %v550_v51 }
  0x1f   :  { %497 = vmatpush3.bf16.msra.mxu0 %v496_v60 }
  0x20   :  { %96 = vadd.xlane.f32.xlu1 %v95_v46 }
  0x21   :  { %72 = vadd.xlane.f32.xlu0 %v71_v47  ;;  %509 = vmatpush3.bf16.msra.mxu1 %v508_v9  ;;  %v175_v47 = vadd.s32 4294967240, %v128_v26 }
  0x22   :  { %510 = vmatprep.subr.bf16.mxu1 %v550_v51 }
  0x23   :  { %v178_v62 = vsub.s32 %v175_v47, %v130_v31 }
  0x25   :  { %512 = vmatpush3.bf16.msra.mxu1 %v511_v12 }
  0x26   :  { %513 = vmatprep.subr.bf16.mxu1 %v550_v51 }
  0x29   :  { %515 = vmatpush3.bf16.msra.mxu1 %v514_v15 }
  0x2a   :  { %516 = vmatprep.subr.bf16.mxu1 %v550_v51 }
  0x2d   :  { %518 = vmatpush3.bf16.msra.mxu1 %v517_v18 }
  0x2e   :  { %519 = vmatprep.subr.bf16.mxu1 %v550_v51 }
  0x91   :  { %v76_v19 = vpop.xlane.xlu1 %75 }
  0x92   :  { %v52_v20 = vpop.xlane.xlu0 %51  ;;  %v185_v51 = vrot.slane %v76_v19, %v131_v40 }
  0x93   :  { %v132_v54 = vrot.slane %v52_v20, %v131_v40  ;;  %v311_v20 = vld [vmem:[%s778_s3 + $0x70] sm:$0xff] }
  0x95   :  { %v79_v21 = vpop.xlane.xlu1 %78 }
  0x96   :  { %v55_v22 = vpop.xlane.xlu0 %54  ;;  %v189_v44 = vrot.slane %v79_v21, %v136_v35  ;;  %v312_v21 = vld [vmem:[%s778_s3 + $0x78] sm:$0xff]  ;;  %s526_s3 = scalar_lea.vmem %s396_s24, 32 }
  0x97   :  { %v137_v48 = vrot.slane %v55_v22, %v136_v35  ;;  %v520_v22 = vpack.c.bf16 %v312_v21, %v311_v20  ;;  %p527_p0 = scmp.ne.s32.totalorder %s396_s24, %s526_s3  ;;  %p532_p2 = scmp.lt.s32.totalorder %s526_s3, %s526_s3 }
  0x98   :  { %v190_v58 = vsel %vm138_vm1, %v189_v44, %v185_v51 }
  0x99   :  { %v82_v24 = vpop.xlane.xlu1 %81  ;;  %v139_v63 = vsel %vm138_vm1, %v137_v48, %v132_v54  ;;  %521 = vmatpush3.bf16.msra.mxu1 %v520_v22  ;;  %p533_p3 = por %p532_p2, %p531_p1 }
  0x9a   :  { %v58_v25 = vpop.xlane.xlu0 %57  ;;  %v194_v49 = vrot.slane %v82_v24, %v143_v38 }
  0x9b   :  { %v144_v52 = vrot.slane %v58_v25, %v143_v38  ;;  %p534_p4 = pnand %p533_p3, %p527_p0 }
  0x9c   :  { %v195_v0 = vsel %vm145_vm2, %v194_v49, %v190_v58 }
  0x9d   :  { %v85_v27 = vpop.xlane.xlu1 %84  ;;  %v146_v3 = vsel %vm145_vm2, %v144_v52, %v139_v63 }
  0x9e   :  { %v61_v29 = vpop.xlane.xlu0 %60  ;;  %v199_v53 = vrot.slane %v85_v27, %v150_v41 }
  0x9f   :  { %v151_v55 = vrot.slane %v61_v29, %v150_v41 }
  0xa0   :  { %v200_v4 = vsel %vm152_vm3, %v199_v53, %v195_v0 }
  0xa1   :  { %v88_v34 = vpop.xlane.xlu1 %87  ;;  %v153_v6 = vsel %vm152_vm3, %v151_v55, %v146_v3 }
  0xa2   :  { %v64_v36 = vpop.xlane.xlu0 %63  ;;  %v204_v56 = vrot.slane %v88_v34, %v157_v42 }
  0xa3   :  { %v158_v59 = vrot.slane %v64_v36, %v157_v42 }
  0xa4   :  { %v205_v7 = vsel %vm159_vm4, %v204_v56, %v200_v4 }
  0xa5   :  { %v91_v43 = vpop.xlane.xlu1 %90  ;;  %v160_v9 = vsel %vm159_vm4, %v158_v59, %v153_v6 }
  0xa6   :  { %v67_v46 = vpop.xlane.xlu0 %66  ;;  %v209_v60 = vrot.slane %v91_v43, %v164_v45 }
  0xa7   :  { %v165_v1 = vrot.slane %v67_v46, %v164_v45 }
  0xa8   :  { %v210_v10 = vsel %vm166_vm5, %v209_v60, %v205_v7 }
  0xa9   :  { %v94_v57 = vpop.xlane.xlu1 %93  ;;  %v167_v13 = vsel %vm166_vm5, %v165_v1, %v160_v9 }
  0xaa   :  { %v70_v61 = vpop.xlane.xlu0 %69  ;;  %v214_v2 = vrot.slane %v94_v57, %v171_v50 }
  0xab   :  { %v172_v5 = vrot.slane %v70_v61, %v171_v50 }
  0xac   :  { %v215_v14 = vsel %vm173_vm6, %v214_v2, %v210_v10 }
  0xad   :  { %v97_v8 = vpop.xlane.xlu1 %96  ;;  %v174_v16 = vsel %vm173_vm6, %v172_v5, %v167_v13 }
  0xae   :  { %v219_v11 = vrot.slane %v97_v8, %v178_v62  ;;  %v73_v12 = vpop.xlane.xlu0 %72 }
  0xaf   :  { %v179_v15 = vrot.slane %v73_v12, %v178_v62 }
  0xb0   :  { %v220_v17 = vsel %vm180_vm7, %v219_v11, %v215_v14 }
  0xb1   :  { %v181_v18 = vsel %vm180_vm7, %v179_v15, %v174_v16 }
  0xb2   :  { %v222_v19 = vsel %vm221_vm8, %v220_v17, %v181_v18 }
  0xb3   :  { %449 = vmatmul.mubr.msk.f32.vlgmr.msra.gmra.mrb[0].mxu0 %vm223_vm9, %v222_v19 }
 0x186   :  { %v292_v24 = vpop.f32.mrb[0].mxu0 }
 0x187   :  { %v293_v25 = vadd.f32 %v403_v23, %v292_v24  ;;  %v450_v26 = vpop.f32.mrb[1].mxu0 }
 0x189   :  { %v296_v27 = vmax.f32 %v293_v25, 0.0 }
 0x18b   :  { %484 = vmatmul.mubr.f32.vlgmr.msra.gmra.mrb[0].mxu1 %v296_v27 }
 0x25e   :  { %v384_v29 = vpop.f32.mrb[0].mxu1 }
 0x25f   :  { %v385_v30 = vadd.f32 %v405_v28, %v384_v29  ;;  %v485_v31 = vpop.f32.mrb[1].mxu1 }
 0x261   :  { %388 = vst [vmem:[#allocation2] sm:$0x3] %v385_v30 }
 0x262   :  { %537 = shalt.err (!%p534_p4)
}
 0x263   :  { %s538_s27 = scalar_lea.hbm %s779_s4, 32 }
 0x264   :  { %p539_p5 = scmp.ne.s32.totalorder %s779_s4, %s538_s27  ;;  %p542_p6 = scmp.lt.u32.totalorder %s538_s27, %s779_s4 }
 0x266   :  { %p544_p7 = pnand %p542_p6, %p539_p5 }
 0x268   :  { %547 = shalt.err (!%p544_p7)
}
 0x269   :  { %398 = dma.vmem_to_hbm [thread:$0]  %s396_s24, 32, %s779_s4, [#allocation3]  }
 0x26a   :  { %548 = dma.done.wait [#allocation3], 32  }
 0x26b   :  { %549 = vsyncadd [#allocation3], 4294967264 }
 0x26c   :  { %402 = vsyncpa [#allocation3], 1 }

</bundles_post_ra>
